<compile_context>
chip_gen: v5e
topology: v5e:2x2
jax: 0.10.0
libtpu: 0.0.40
codegen_flags: <defaults>
</compile_context>

<pallas_src>
import math
import functools

import jax
import jax.numpy as jnp
import numpy as np
from jax.experimental import pallas as pl
from jax.experimental.pallas import tpu as pltpu


def _round_up(x, m):
    return -(-x // m) * m


def _pad_axis(x, axis, new_size):
    pad = new_size - x.shape[axis]
    if pad == 0:
        return x
    cfg = [(0, 0)] * x.ndim
    cfg[axis] = (0, pad)
    return jnp.pad(x, cfg)


def _vmem_budget():
    """Generation-aware (working-set budget, vmem_limit_bytes, tk cap)."""
    try:
        cap = pltpu.get_tpu_info().vmem_capacity_bytes
    except Exception:
        cap = 64 * 1024 * 1024                      # assume the smallest (v7x per-TC) if unknown
    if cap >= 128 * 1024 * 1024:                    # v5e / v6e: 128 MiB physical VMEM
        return 64 * 1024 * 1024, 100 * 1024 * 1024, 1024
    # v7x: only 64 MiB per TensorCore -- keep the working set small, don't starve pipelining.
    return 24 * 1024 * 1024, 48 * 1024 * 1024, 512


def _pick_tiles(B, nq, nk, d_pad, dv_pad, itemsize, key_block, budget, tk_cap):
    # Key tile: 128-multiples only (lane-dense score matrix, no fringe MXU passes).
    if key_block is None:
        tk = min(_round_up(nk, 128), tk_cap)
    else:
        tk = min(_round_up(key_block, 128), _round_up(nk, 128))
    n_key_tiles = _round_up(nk, tk) // tk

    def step_bytes(bt, tk_, kv_bufs_):
        q_blk = bt * nq * d_pad * itemsize
        kv_blk = bt * tk_ * (d_pad + dv_pad) * itemsize
        o_blk = bt * nq * dv_pad * itemsize
        vl_blk = bt * nq * 4
        scratch = q_blk + bt * nq * (dv_pad + 2) * 4          # scaled-Q + m/l/acc (f32)
        tmp = 3 * bt * nq * tk_ * 4                           # s, p, col-iota temporaries
        return 2 * (q_blk + o_blk + vl_blk) + kv_bufs_ * kv_blk + scratch + tmp

    # Deeper K/V buffering when per-tile compute is short (small nq) and there are enough
    # key tiles to pipeline.
    kv_bufs = 3 if (nq <= 64 and n_key_tiles >= 3) else 2

    # Bt only amortizes the ~0.35us per-grid-step overhead: each batch element is its own
    # (nq x d).(d x tk) matmul, so Bt does NOT enlarge the MXU M dimension.
    bt = max(1, min(B, pl.cdiv(256, max(nq, 1))))
    bt = min(bt, max(1, B // 2))     # keep >= 2 steps on the "parallel" axis (v7x dual-TC)
    while bt > 1 and step_bytes(bt, tk, kv_bufs) > budget:
        bt -= 1
    while B % bt:
        bt -= 1
    if kv_bufs > 2 and step_bytes(bt, tk, kv_bufs) > budget:
        kv_bufs = 2
    while tk > 128 and step_bytes(bt, tk, kv_bufs) > budget:
        tk = _round_up(tk // 2, 128)
    return bt, tk, kv_bufs


def _attn_kernel(nt_ref, q_ref, k_ref, v_ref, vl_ref, o_ref,
                 qs_sc, m_sc, l_sc, acc_sc, *, scale, tk, nk, has_vl, has_pad):
    bi = pl.program_id(0)
    ki = pl.program_id(1)

    @pl.when(ki == 0)
    def _():
        # 1/sqrt(d) folded into Q (the smallest operand), computed ONCE per batch tile and
        # reused across all key tiles.  (bf16 path: the scale is applied in bf16 before the
        # matmul -- one extra rounding step vs. the reference which scales f32 scores.)
        qs_sc[...] = (q_ref[...] * scale).astype(qs_sc.dtype)
        m_sc[...] = jnp.full(m_sc.shape, -jnp.inf, dtype=m_sc.dtype)
        l_sc[...] = jnp.zeros(l_sc.shape, dtype=l_sc.dtype)
        acc_sc[...] = jnp.zeros(acc_sc.shape, dtype=acc_sc.dtype)

    # Skip key tiles that are fully masked for this whole batch tile (scalar-prefetched tile
    # count); the K/V index_map clamps to the last needed tile so no new DMA is issued.
    @pl.when(ki < nt_ref[bi])
    def _():
        # Native-dtype operands straight to the MXU; f32 accumulation.
        s = jnp.einsum('bqd,bkd->bqk', qs_sc[...], k_ref[...],
                       preferred_element_type=jnp.float32)        # (Bt, nq, tk) f32

        if has_vl or has_pad:
            col = jax.lax.broadcasted_iota(jnp.int32, s.shape, 2) + ki * tk
            if has_vl:
                # torch masked_softmax semantics: out-of-valid-length scores -> -1e20
                s = jnp.where(col < vl_ref[...], s, jnp.float32(-1e20))
            if has_pad:
                # zero-padded (nonexistent) keys: far below -1e20 so exp() is exactly 0
                # even when every real key of a row is masked (valid_len == 0 rows).
                s = jnp.where(col < nk, s, jnp.float32(-1e30))

        # Online softmax update.
        m_prev = m_sc[...]
        m_new = jnp.maximum(m_prev, jnp.max(s, axis=-1, keepdims=True))
        alpha = jnp.exp(m_prev - m_new)
        p = jnp.exp(s - m_new)
        l_sc[...] = alpha * l_sc[...] + jnp.sum(p, axis=-1, keepdims=True)
        acc_sc[...] = alpha * acc_sc[...] + jnp.einsum(
            'bqk,bkv->bqv', p.astype(v_ref.dtype), v_ref[...],
            preferred_element_type=jnp.float32)
        m_sc[...] = m_new

    # TODO(synk): nn.Dropout on the attention weights is identity at inference; not applied.

    @pl.when(ki == pl.num_programs(1) - 1)
    def _():
        inv_l = pl.reciprocal(l_sc[...], approx=False)    # exact; runs once per batch tile
        o_ref[...] = (acc_sc[...] * inv_l).astype(o_ref.dtype)


def scaled_dot_product_attention(Q, K, V, valid_lens=None, *, key_block=None):
    """Pallas equivalent of ScaledDotProductAttention.forward (eval mode)."""
    assert Q.shape[-1] == K.shape[-1], "query_size must equal key_size"
    B, nq, d = Q.shape
    _, nk, dv = V.shape
    assert K.shape == (B, nk, d)

    has_vl = valid_lens is not None
    if not has_vl:
        vl = jnp.full((B, nq, 1), nk, dtype=jnp.int32)
    elif valid_lens.ndim == 1:
        vl = jnp.broadcast_to(valid_lens.astype(jnp.int32)[:, None, None], (B, nq, 1))
    elif valid_lens.ndim == 2:
        assert valid_lens.shape == (B, nq)
        vl = valid_lens.astype(jnp.int32)[..., None]
    else:
        raise ValueError("wrong valid_lens")
    vl = jnp.minimum(vl, nk)

    scale = 1.0 / math.sqrt(d)                     # scale uses the *original* feature size

    d_pad = _round_up(d, 128)
    dv_pad = _round_up(dv, 128)
    itemsize = jnp.dtype(Q.dtype).itemsize

    budget, vmem_limit, tk_cap = _vmem_budget()
    Bt, tk, kv_bufs = _pick_tiles(B, nq, nk, d_pad, dv_pad, itemsize, key_block, budget, tk_cap)
    nk_pad = _round_up(nk, tk)
    n_key_tiles = nk_pad // tk
    num_batch_tiles = B // Bt
    has_pad = nk_pad != nk

    Qp = _pad_axis(Q, 2, d_pad)
    Kp = _pad_axis(_pad_axis(K, 2, d_pad), 1, nk_pad)
    Vp = _pad_axis(_pad_axis(V, 2, dv_pad), 1, nk_pad)

    # Per-batch-tile count of key tiles that contain any unmasked key (scalar prefetch).
    # valid_len == 0 rows fall back to "all tiles" so they reproduce the reference's
    # uniform-softmax-over-all-keys behaviour.
    if has_vl:
        vl_bt = vl[..., 0].reshape(num_batch_tiles, Bt * nq)
        max_vl = jnp.max(vl_bt, axis=1)
        min_vl = jnp.min(vl_bt, axis=1)
        nt = jnp.clip((max_vl + tk - 1) // tk, 1, n_key_tiles)
        nt = jnp.where(min_vl == 0, n_key_tiles, nt).astype(jnp.int32)
    else:
        nt = jnp.full((num_batch_tiles,), n_key_tiles, dtype=jnp.int32)

    kernel = functools.partial(_attn_kernel, scale=scale, tk=tk, nk=nk,
                               has_vl=has_vl, has_pad=has_pad)

    cost = pl.CostEstimate(
        flops=2 * B * nq * nk * (d + dv),
        transcendentals=B * nq * nk,
        bytes_accessed=int(Qp.size * itemsize
                           + Kp.size * jnp.dtype(K.dtype).itemsize
                           + Vp.size * jnp.dtype(V.dtype).itemsize
                           + vl.size * 4
                           + B * nq * dv_pad * itemsize),
    )

    def kv_index_map(bi, ki, nt_ref):
        # Clamp to the last needed tile: skipped grid steps keep the same block index, so
        # Pallas issues no fresh K/V DMA for them.
        return (bi, jnp.minimum(ki, nt_ref[bi] - 1), 0)

    def run(kv_bufs_):
        kv_kwargs = {} if kv_bufs_ == 2 else {"pipeline_mode": pl.Buffered(kv_bufs_)}
        return pl.pallas_call(
            kernel,
            out_shape=jax.ShapeDtypeStruct((B, nq, dv_pad), Q.dtype),
            grid_spec=pltpu.PrefetchScalarGridSpec(
                num_scalar_prefetch=1,
                grid=(num_batch_tiles, n_key_tiles),
                in_specs=[
                    pl.BlockSpec((Bt, nq, d_pad), lambda bi, ki, nt_ref: (bi, 0, 0)),
                    pl.BlockSpec((Bt, tk, d_pad), kv_index_map, **kv_kwargs),
                    pl.BlockSpec((Bt, tk, dv_pad), kv_index_map, **kv_kwargs),
                    pl.BlockSpec((Bt, nq, 1), lambda bi, ki, nt_ref: (bi, 0, 0)),
                ],
                out_specs=pl.BlockSpec((Bt, nq, dv_pad), lambda bi, ki, nt_ref: (bi, 0, 0)),
                scratch_shapes=[
                    pltpu.VMEM((Bt, nq, d_pad), Q.dtype),        # scaled Q (resident)
                    pltpu.VMEM((Bt, nq, 1), jnp.float32),        # running max m
                    pltpu.VMEM((Bt, nq, 1), jnp.float32),        # running denom l
                    pltpu.VMEM((Bt, nq, dv_pad), jnp.float32),   # un-normalized output acc
                ],
            ),
            compiler_params=pltpu.CompilerParams(
                dimension_semantics=("parallel", "arbitrary"),
                vmem_limit_bytes=vmem_limit,
            ),
            cost_estimate=cost,
        )(nt, Qp, Kp, Vp, vl)

    try:
        out = run(kv_bufs)
    except Exception:
        if kv_bufs == 2:
            raise
        out = run(2)   # fall back to default double-buffering if Buffered(3) is rejected

    return out[:, :, :dv] if dv_pad != dv else out


def _reference(Q, K, V, valid_lens):
    d = Q.shape[-1]
    S = jnp.einsum("bqd,bkd->bqk", Q.astype(jnp.float32), K.astype(jnp.float32)) / math.sqrt(d)
    if valid_lens is not None:
        if valid_lens.ndim == 1:
            vlr = jnp.broadcast_to(valid_lens[:, None], S.shape[:-1])
        else:
            vlr = valid_lens
        col = jnp.arange(S.shape[-1])[None, None, :]
        S = jnp.where(col < vlr[..., None], S, -1e20)
    W = jax.nn.softmax(S, axis=-1)
    return jnp.einsum("bqk,bkv->bqv", W, V.astype(jnp.float32))


if __name__ == "__main__":
    # Small deterministic shapes consistent with the module's forward.
    B, nq, nk, d, dv = 2, 8, 8, 32, 32
    key = jax.random.PRNGKey(0)
    kq, kk, kv = jax.random.split(key, 3)
    Q = jax.random.normal(kq, (B, nq, d), dtype=jnp.float32)
    K = jax.random.normal(kk, (B, nk, d), dtype=jnp.float32)
    V = jax.random.normal(kv, (B, nk, dv), dtype=jnp.float32)
    valid_lens = jnp.array([3, 6], dtype=jnp.int32)          # 1-D valid_lens, shape (batch,)

    out = scaled_dot_product_attention(Q, K, V, valid_lens)
    jax.block_until_ready(out)
    np.testing.assert_allclose(np.asarray(out), np.asarray(_reference(Q, K, V, valid_lens)),
                               rtol=1e-2, atol=1e-2)

    # valid_lens=None with key padding (nk=8 padded to the 128-wide key tile).
    out_none = scaled_dot_product_attention(Q, K, V, None)
    jax.block_until_ready(out_none)
    np.testing.assert_allclose(np.asarray(out_none), np.asarray(_reference(Q, K, V, None)),
                               rtol=1e-2, atol=1e-2)

    # Fully unmasked fast path: nk == tk == 128 (no valid-len mask, no padding mask).
    nk_fast = 128
    Kf = jax.random.normal(kk, (B, nk_fast, d), dtype=jnp.float32)
    Vf = jax.random.normal(kv, (B, nk_fast, dv), dtype=jnp.float32)
    out_fast = scaled_dot_product_attention(Q, Kf, Vf, None)
    jax.block_until_ready(out_fast)
    np.testing.assert_allclose(np.asarray(out_fast), np.asarray(_reference(Q, Kf, Vf, None)),
                               rtol=1e-2, atol=1e-2)

    # Multi-key-tile online softmax + ragged tile skipping + a valid_len == 0 row,
    # with 2-D per-query valid_lens.
    nk2 = 300
    K2 = jax.random.normal(kk, (B, nk2, d), dtype=jnp.float32)
    V2 = jax.random.normal(kv, (B, nk2, dv), dtype=jnp.float32)
    vl2 = jnp.array([[0] + [5] * (nq - 1), [170] * nq], dtype=jnp.int32)  # (batch, n_query)
    out2 = scaled_dot_product_attention(Q, K2, V2, vl2, key_block=128)
    jax.block_until_ready(out2)
    np.testing.assert_allclose(np.asarray(out2), np.asarray(_reference(Q, K2, V2, vl2)),
                               rtol=1e-2, atol=1e-2)

    # bf16 operands (native-dtype MXU path, f32 accumulation) — loose check vs f32 reference.
    out_bf16 = scaled_dot_product_attention(
        Q.astype(jnp.bfloat16), K.astype(jnp.bfloat16), V.astype(jnp.bfloat16), valid_lens)
    jax.block_until_ready(out_bf16)
    np.testing.assert_allclose(np.asarray(out_bf16, dtype=np.float32),
                               np.asarray(_reference(Q, K, V, valid_lens)),
                               rtol=1e-1, atol=1e-1)

    print("KERNEL_OK")
</pallas_src>

<mosaic_0001>
module attributes {stable_mosaic.version = 11 : i64} {
  func.func @_attn_kernel(%arg0: i32, %arg1: i32, %arg2: memref<2xi32, #tpu.memory_space<smem>>, %arg3: memref<1x8x128xf32, #tpu.memory_space<vmem>>, %arg4: memref<1x128x128xf32, #tpu.memory_space<vmem>>, %arg5: memref<1x128x128xf32, #tpu.memory_space<vmem>>, %arg6: memref<1x8x1xi32, #tpu.memory_space<vmem>>, %arg7: memref<1x8x128xf32, #tpu.memory_space<vmem>>, %arg8: memref<1x8x128xf32, #tpu.memory_space<vmem>>, %arg9: memref<1x8x1xf32, #tpu.memory_space<vmem>>, %arg10: memref<1x8x1xf32, #tpu.memory_space<vmem>>, %arg11: memref<1x8x128xf32, #tpu.memory_space<vmem>>) attributes {dimension_semantics = [#tpu.dimension_semantics<parallel>, #tpu.dimension_semantics<arbitrary>], iteration_bounds = array<i64: 2, 1>, scalar_prefetch = 1 : i64, scratch_operands = 4 : i64, tpu.core_type = #tpu.core_type<tc>, window_params = [{transform_indices = @transform_0, window_bounds = array<i64: 1, 8, 128>}, {transform_indices = @transform_1, window_bounds = array<i64: 1, 128, 128>}, {transform_indices = @transform_2, window_bounds = array<i64: 1, 128, 128>}, {transform_indices = @transform_3, window_bounds = array<i64: 1, 8, 1>}, {transform_indices = @transform_4, window_bounds = array<i64: 1, 8, 128>}]} {
    %c0_i32 = arith.constant 0 : i32
    %0 = arith.cmpi eq, %arg1, %c0_i32 : i32
    %1 = arith.extui %0 : i1 to i32
    %c0_i32_0 = arith.constant 0 : i32
    %2 = arith.cmpi ne, %1, %c0_i32_0 : i32
    scf.if %2 {
      %c0 = arith.constant 0 : index
      %c0_4 = arith.constant 0 : index
      %c0_5 = arith.constant 0 : index
      %11 = vector.load %arg3[%c0, %c0_4, %c0_5] : memref<1x8x128xf32, #tpu.memory_space<vmem>>, vector<1x8x128xf32>
      %cst = arith.constant 0.176776692 : f32
      %12 = vector.broadcast %cst : f32 to vector<1x8x128xf32>
      %13 = arith.mulf %11, %12 : vector<1x8x128xf32>
      %c0_6 = arith.constant 0 : index
      %c0_7 = arith.constant 0 : index
      %c0_8 = arith.constant 0 : index
      %14 = vector.load %arg8[%c0_6, %c0_7, %c0_8] : memref<1x8x128xf32, #tpu.memory_space<vmem>>, vector<1x8x128xf32>
      tpu.vector_store %arg8[%c0_6, %c0_7, %c0_8], %13 {strides = array<i32>} : memref<1x8x128xf32, #tpu.memory_space<vmem>>, vector<1x8x128xf32>,
      %cst_9 = arith.constant 0xFF800000 : f32
      %15 = vector.broadcast %cst_9 : f32 to vector<1x8x1xf32>
      %c0_10 = arith.constant 0 : index
      %c0_11 = arith.constant 0 : index
      %c0_12 = arith.constant 0 : index
      %16 = vector.load %arg9[%c0_10, %c0_11, %c0_12] : memref<1x8x1xf32, #tpu.memory_space<vmem>>, vector<1x8x1xf32>
      tpu.vector_store %arg9[%c0_10, %c0_11, %c0_12], %15 {strides = array<i32>} : memref<1x8x1xf32, #tpu.memory_space<vmem>>, vector<1x8x1xf32>,
      %cst_13 = arith.constant 0.000000e+00 : f32
      %17 = vector.broadcast %cst_13 : f32 to vector<1x8x1xf32>
      %c0_14 = arith.constant 0 : index
      %c0_15 = arith.constant 0 : index
      %c0_16 = arith.constant 0 : index
      %18 = vector.load %arg10[%c0_14, %c0_15, %c0_16] : memref<1x8x1xf32, #tpu.memory_space<vmem>>, vector<1x8x1xf32>
      tpu.vector_store %arg10[%c0_14, %c0_15, %c0_16], %17 {strides = array<i32>} : memref<1x8x1xf32, #tpu.memory_space<vmem>>, vector<1x8x1xf32>,
      %cst_17 = arith.constant 0.000000e+00 : f32
      %19 = vector.broadcast %cst_17 : f32 to vector<1x8x128xf32>
      %c0_18 = arith.constant 0 : index
      %c0_19 = arith.constant 0 : index
      %c0_20 = arith.constant 0 : index
      %20 = vector.load %arg11[%c0_18, %c0_19, %c0_20] : memref<1x8x128xf32, #tpu.memory_space<vmem>>, vector<1x8x128xf32>
      tpu.vector_store %arg11[%c0_18, %c0_19, %c0_20], %19 {strides = array<i32>} : memref<1x8x128xf32, #tpu.memory_space<vmem>>, vector<1x8x128xf32>,
    } else {
    }
    %3 = arith.index_cast %arg0 : i32 to index
    %4 = memref.load %arg2[%3] : memref<2xi32, #tpu.memory_space<smem>>
    %5 = arith.cmpi slt, %arg1, %4 : i32
    %6 = arith.extui %5 : i1 to i32
    %c0_i32_1 = arith.constant 0 : i32
    %7 = arith.cmpi ne, %6, %c0_i32_1 : i32
    scf.if %7 {
      %c0 = arith.constant 0 : index
      %c0_4 = arith.constant 0 : index
      %c0_5 = arith.constant 0 : index
      %11 = vector.load %arg8[%c0, %c0_4, %c0_5] : memref<1x8x128xf32, #tpu.memory_space<vmem>>, vector<1x8x128xf32>
      %c0_6 = arith.constant 0 : index
      %c0_7 = arith.constant 0 : index
      %c0_8 = arith.constant 0 : index
      %12 = vector.load %arg4[%c0_6, %c0_7, %c0_8] : memref<1x128x128xf32, #tpu.memory_space<vmem>>, vector<1x128x128xf32>
      "tpu.trace_start"() <{level = 10 : i32, message = "bqd,bkd->bqk"}> : () -> ()
      %cst = arith.constant dense<0.000000e+00> : vector<1x8x128xf32>
      %13 = tpu.matmul %11, %12, %cst {dimension_numbers = #tpu.dot_dimension_numbers<[2], [2], [1], [1], [0, 0, 0, 1, 1, 1], [0], [0]>} : vector<1x8x128xf32>, vector<1x128x128xf32>, vector<1x8x128xf32> -> vector<1x8x128xf32>
      "tpu.trace_stop"() : () -> ()
      %14 = tpu.iota {dimensions = array<i32: 2>} : vector<1x8x128xi32>
      %c128_i32 = arith.constant 128 : i32
      %15 = arith.muli %arg1, %c128_i32 : i32
      %16 = vector.broadcast %15 : i32 to vector<1x8x128xi32>
      %17 = arith.addi %14, %16 : vector<1x8x128xi32>
      %c0_9 = arith.constant 0 : index
      %c0_10 = arith.constant 0 : index
      %c0_11 = arith.constant 0 : index
      %18 = vector.load %arg6[%c0_9, %c0_10, %c0_11] : memref<1x8x1xi32, #tpu.memory_space<vmem>>, vector<1x8x1xi32>
      %19 = vector.broadcast %18 : vector<1x8x1xi32> to vector<1x8x128xi32>
      %20 = arith.cmpi slt, %17, %19 : vector<1x8x128xi32>
      %cst_12 = arith.constant -1.000000e+20 : f32
      %21 = vector.broadcast %cst_12 : f32 to vector<1x8x128xf32>
      %22 = arith.select %20, %13, %21 : vector<1x8x128xi1>, vector<1x8x128xf32>
      %c8_i32 = arith.constant 8 : i32
      %23 = vector.broadcast %c8_i32 : i32 to vector<1x8x128xi32>
      %24 = arith.cmpi slt, %17, %23 : vector<1x8x128xi32>
      %cst_13 = arith.constant -1.000000e+30 : f32
      %25 = vector.broadcast %cst_13 : f32 to vector<1x8x128xf32>
      %26 = arith.select %24, %22, %25 : vector<1x8x128xi1>, vector<1x8x128xf32>
      %c0_14 = arith.constant 0 : index
      %c0_15 = arith.constant 0 : index
      %c0_16 = arith.constant 0 : index
      %27 = vector.load %arg9[%c0_14, %c0_15, %c0_16] : memref<1x8x1xf32, #tpu.memory_space<vmem>>, vector<1x8x1xf32>
      %cst_17 = arith.constant dense<0xFF800000> : vector<1x8xf32>
      %28 = vector.multi_reduction <maximumf>, %26, %cst_17 [2] : vector<1x8x128xf32> to vector<1x8xf32>
      %29 = vector.shape_cast %28 : vector<1x8xf32> to vector<1x8x1xf32>
      %30 = arith.maximumf %27, %29 : vector<1x8x1xf32>
      %31 = arith.subf %27, %30 : vector<1x8x1xf32>
      %32 = math.exp %31 : vector<1x8x1xf32>
      %33 = vector.broadcast %30 : vector<1x8x1xf32> to vector<1x8x128xf32>
      %34 = arith.subf %26, %33 : vector<1x8x128xf32>
      %35 = math.exp %34 : vector<1x8x128xf32>
      %c0_18 = arith.constant 0 : index
      %c0_19 = arith.constant 0 : index
      %c0_20 = arith.constant 0 : index
      %36 = vector.load %arg10[%c0_18, %c0_19, %c0_20] : memref<1x8x1xf32, #tpu.memory_space<vmem>>, vector<1x8x1xf32>
      %37 = arith.mulf %32, %36 : vector<1x8x1xf32>
      %cst_21 = arith.constant dense<0.000000e+00> : vector<1x8xf32>
      %38 = vector.multi_reduction <add>, %35, %cst_21 [2] : vector<1x8x128xf32> to vector<1x8xf32>
      %39 = vector.shape_cast %38 : vector<1x8xf32> to vector<1x8x1xf32>
      %40 = arith.addf %37, %39 : vector<1x8x1xf32>
      %c0_22 = arith.constant 0 : index
      %c0_23 = arith.constant 0 : index
      %c0_24 = arith.constant 0 : index
      %41 = vector.load %arg10[%c0_22, %c0_23, %c0_24] : memref<1x8x1xf32, #tpu.memory_space<vmem>>, vector<1x8x1xf32>
      tpu.vector_store %arg10[%c0_22, %c0_23, %c0_24], %40 {strides = array<i32>} : memref<1x8x1xf32, #tpu.memory_space<vmem>>, vector<1x8x1xf32>,
      %c0_25 = arith.constant 0 : index
      %c0_26 = arith.constant 0 : index
      %c0_27 = arith.constant 0 : index
      %42 = vector.load %arg11[%c0_25, %c0_26, %c0_27] : memref<1x8x128xf32, #tpu.memory_space<vmem>>, vector<1x8x128xf32>
      %43 = vector.broadcast %32 : vector<1x8x1xf32> to vector<1x8x128xf32>
      %44 = arith.mulf %43, %42 : vector<1x8x128xf32>
      %c0_28 = arith.constant 0 : index
      %c0_29 = arith.constant 0 : index
      %c0_30 = arith.constant 0 : index
      %45 = vector.load %arg5[%c0_28, %c0_29, %c0_30] : memref<1x128x128xf32, #tpu.memory_space<vmem>>, vector<1x128x128xf32>
      "tpu.trace_start"() <{level = 10 : i32, message = "bqk,bkv->bqv"}> : () -> ()
      %cst_31 = arith.constant dense<0.000000e+00> : vector<1x8x128xf32>
      %46 = tpu.matmul %35, %45, %cst_31 {dimension_numbers = #tpu.dot_dimension_numbers<[2], [1], [1], [2], [0, 0, 0, 1, 1, 2], [0], [0]>} : vector<1x8x128xf32>, vector<1x128x128xf32>, vector<1x8x128xf32> -> vector<1x8x128xf32>
      "tpu.trace_stop"() : () -> ()
      %47 = arith.addf %44, %46 : vector<1x8x128xf32>
      %c0_32 = arith.constant 0 : index
      %c0_33 = arith.constant 0 : index
      %c0_34 = arith.constant 0 : index
      %48 = vector.load %arg11[%c0_32, %c0_33, %c0_34] : memref<1x8x128xf32, #tpu.memory_space<vmem>>, vector<1x8x128xf32>
      tpu.vector_store %arg11[%c0_32, %c0_33, %c0_34], %47 {strides = array<i32>} : memref<1x8x128xf32, #tpu.memory_space<vmem>>, vector<1x8x128xf32>,
      %c0_35 = arith.constant 0 : index
      %c0_36 = arith.constant 0 : index
      %c0_37 = arith.constant 0 : index
      %49 = vector.load %arg9[%c0_35, %c0_36, %c0_37] : memref<1x8x1xf32, #tpu.memory_space<vmem>>, vector<1x8x1xf32>
      tpu.vector_store %arg9[%c0_35, %c0_36, %c0_37], %30 {strides = array<i32>} : memref<1x8x1xf32, #tpu.memory_space<vmem>>, vector<1x8x1xf32>,
    } else {
    }
    %c0_i32_2 = arith.constant 0 : i32
    %8 = arith.cmpi eq, %arg1, %c0_i32_2 : i32
    %9 = arith.extui %8 : i1 to i32
    %c0_i32_3 = arith.constant 0 : i32
    %10 = arith.cmpi ne, %9, %c0_i32_3 : i32
    scf.if %10 {
      %c0 = arith.constant 0 : index
      %c0_4 = arith.constant 0 : index
      %c0_5 = arith.constant 0 : index
      %11 = vector.load %arg10[%c0, %c0_4, %c0_5] : memref<1x8x1xf32, #tpu.memory_space<vmem>>, vector<1x8x1xf32>
      %12 = tpu.reciprocal %11 : vector<1x8x1xf32> -> vector<1x8x1xf32>
      %c0_6 = arith.constant 0 : index
      %c0_7 = arith.constant 0 : index
      %c0_8 = arith.constant 0 : index
      %13 = vector.load %arg11[%c0_6, %c0_7, %c0_8] : memref<1x8x128xf32, #tpu.memory_space<vmem>>, vector<1x8x128xf32>
      %14 = vector.broadcast %12 : vector<1x8x1xf32> to vector<1x8x128xf32>
      %15 = arith.mulf %13, %14 : vector<1x8x128xf32>
      %c0_9 = arith.constant 0 : index
      %c0_10 = arith.constant 0 : index
      %c0_11 = arith.constant 0 : index
      %16 = vector.load %arg7[%c0_9, %c0_10, %c0_11] : memref<1x8x128xf32, #tpu.memory_space<vmem>>, vector<1x8x128xf32>
      tpu.vector_store %arg7[%c0_9, %c0_10, %c0_11], %15 {strides = array<i32>} : memref<1x8x128xf32, #tpu.memory_space<vmem>>, vector<1x8x128xf32>,
    } else {
    }
    return
  }
  func.func @transform_0(%arg0: i32, %arg1: i32, %arg2: memref<2xi32, #tpu.memory_space<smem>>) -> (i32, i32, i32) {
    %c0_i32 = arith.constant 0 : i32
    %c0_i32_0 = arith.constant 0 : i32
    %c0_i32_1 = arith.constant 0 : i32
    return %arg0, %c0_i32, %c0_i32_0 : i32, i32, i32
  }
  func.func @transform_1(%arg0: i32, %arg1: i32, %arg2: memref<2xi32, #tpu.memory_space<smem>>) -> (i32, i32, i32) {
    %0 = arith.index_cast %arg0 : i32 to index
    %1 = memref.load %arg2[%0] : memref<2xi32, #tpu.memory_space<smem>>
    %c1_i32 = arith.constant 1 : i32
    %2 = arith.subi %1, %c1_i32 : i32
    %3 = arith.minsi %arg1, %2 : i32
    %c0_i32 = arith.constant 0 : i32
    %c0_i32_0 = arith.constant 0 : i32
    return %arg0, %3, %c0_i32 : i32, i32, i32
  }
  func.func @transform_2(%arg0: i32, %arg1: i32, %arg2: memref<2xi32, #tpu.memory_space<smem>>) -> (i32, i32, i32) {
    %0 = arith.index_cast %arg0 : i32 to index
    %1 = memref.load %arg2[%0] : memref<2xi32, #tpu.memory_space<smem>>
    %c1_i32 = arith.constant 1 : i32
    %2 = arith.subi %1, %c1_i32 : i32
    %3 = arith.minsi %arg1, %2 : i32
    %c0_i32 = arith.constant 0 : i32
    %c0_i32_0 = arith.constant 0 : i32
    return %arg0, %3, %c0_i32 : i32, i32, i32
  }
  func.func @transform_3(%arg0: i32, %arg1: i32, %arg2: memref<2xi32, #tpu.memory_space<smem>>) -> (i32, i32, i32) {
    %c0_i32 = arith.constant 0 : i32
    %c0_i32_0 = arith.constant 0 : i32
    %c0_i32_1 = arith.constant 0 : i32
    return %arg0, %c0_i32, %c0_i32_0 : i32, i32, i32
  }
  func.func @transform_4(%arg0: i32, %arg1: i32, %arg2: memref<2xi32, #tpu.memory_space<smem>>) -> (i32, i32, i32) {
    %c0_i32 = arith.constant 0 : i32
    %c0_i32_0 = arith.constant 0 : i32
    %c0_i32_1 = arith.constant 0 : i32
    return %arg0, %c0_i32, %c0_i32_0 : i32, i32, i32
  }
}

</mosaic_0001>

<bundles_post_ra>
// kernel: tpu_custom_call.1
= control target key start
LH: loop header
LB: loop body
LE: loop exit
PB: predicated region body
PF: predicated region fallthrough
CT: control target
= control target key end

     0   :  { %s1049_s21 = smov [#allocation7]   ;;  %s1451_s0 = inlined_call_operand.vmem [shape: s32[2], index: 0, kind: input, shape index: {}]   ;;  %s1452_s1 = inlined_call_operand.vmem [shape: f32[2,8,128], index: 1, kind: input, shape index: {}]   ;;  %s1453_s2 = inlined_call_operand.hbm [shape: f32[2,128,128], index: 2, kind: input, shape index: {}]   ;;  %s1454_s3 = inlined_call_operand.hbm [shape: f32[2,128,128], index: 3, kind: input, shape index: {}]   ;;  %s1455_s4 = inlined_call_operand.vmem [shape: s32[2,8,1], index: 4, kind: input, shape index: {}]   ;;  %s1456_s5 = inlined_call_operand.hbm [shape: f32[2,8,128], index: 5, kind: output, shape index: {}]  }
   0x1   :  { %1472 = sst [smem:[#allocation33_spill]] %s1452_s1  ;;  %s11_s20 = sshll.u32 %s1451_s0, 4  ;;  %s12_s20 = int_to_ptr.vmem [resolvable:$true] %s11_s20 }
   0x2   :  { %1473 = sst [smem:[#allocation34_spill]] %s1453_s2 }
   0x3   :  { %1474 = sst [smem:[#allocation35_spill]] %s1455_s4 }
   0x4   :  { %1475 = sst [smem:[#allocation36_spill]] %s1456_s5 }
   0x5   :  { %14 = dma.vmem_to_smem %s12_s20, 16, %s1049_s21, [#allocation6] }
   0x6   :  { %987 = dma.done.wait [#allocation6], 16 }
   0x7   :  { %988 = vsyncadd [#allocation6], 4294967280 }
   0x8   :  { %17 = sfence }
   0x9   :  { %18 = vsyncpa [#allocation9], 0 }
   0xa   :  { %20 = vsyncpa [#allocation9 + $0x1], 0 }
   0xb   :  { %21 = vsyncpa [#allocation12], 0 }
   0xc   :  { %23 = vsyncpa [#allocation12 + $0x1], 0 }
   0xd   :  { %24 = vsyncpa [#allocation10], 0 }
   0xe   :  { %26 = vsyncpa [#allocation10 + $0x1], 0  ;;  %s1089_s22 = smov 0   ;;  %s1091_s23 = smov 0  }
   0xf   :  { %s1093_s24 = smov 0   ;;  %s1095_s25 = smov 0  }
  0x10   :  { %s1097_s0 = smov 0   ;;  %s1099_s26 = smov 0  }
  0x11   :  { %s1101_s27 = smov 0   ;;  %s1103_s28 = smov 0  }
  0x12   :  { %s1105_s29 = smov 0   ;;  %s1107_s30 = smov 0  }
  0x13   :  { %s1109_s6 = smov 0   ;;  %s1111_s7 = smov 0  }
  0x14 LB: > { %1476 = sst [smem:[#allocation22_spill]] %s1003_s22  ;;  %s44_s8 = sadd.s32 1, %s1043_s6  ;;  %s1047_s7 = sphi %s1111_s7, %s32_s7   ;;  %s1043_s6 = sphi %s1109_s6, %s1532_s6   ;;  %s1039_s30 = sphi %s1107_s30, %s1531_s30   ;;  %s1035_s29 = sphi %s1105_s29, %s1522_s29   ;;  %s1031_s28 = sphi %s1103_s28, %s1530_s28   ;;  %s1027_s27 = sphi %s1101_s27, %s1529_s27   ;;  %s1023_s26 = sphi %s1099_s26, %s1528_s26   ;;  %s1019_s0 = sphi %s1097_s0, %s1527_s0   ;;  %s1015_s25 = sphi %s1095_s25, %s1526_s25   ;;  %s1011_s24 = sphi %s1093_s24, %s1519_s24   ;;  %s1007_s23 = sphi %s1091_s23, %s1525_s23   ;;  %s1003_s22 = sphi %s1089_s22, %s1524_s22  }
  0x15   : > { %1477 = sst [smem:[#allocation23_spill]] %s1011_s24  ;;  %s1457_s10 = sadd.s32 4294967295, %s1047_s7  }
  0x16   : > { %1478 = sst [smem:[#allocation24_spill]] %s1035_s29  ;;  %p46_p0 = scmp.ge.s32.totalorder %s44_s8, 2 }
  0x17   : > { %1479 = sst [smem:[#allocation25_spill]] %s1039_s30  ;;  %s87_s12 = sadd.s32 1, %s1035_s29 }
  0x18   : > { %s74_s9 = sld [smem:[#allocation7 + %s1043_s6]]  ;;  %s1534_s8 = smov (%p46_p0, %s44_s8), 0 }
  0x19   : > { %1480 = sst [smem:[#allocation26_spill]] %s1534_s8  ;;  %p94_p1 = scmp.ne.s32.totalorder %s1035_s29, %s1031_s28 }
  0x1a   : > { %p100_p2 = scmp.ne.s32.totalorder %s1031_s28, %s1027_s27  ;;  %s78_s13 = sld [smem:[#allocation7 + %s1534_s8]] }
  0x1b   : > { %p95_p3 = scmp.eq.s32.totalorder %s1047_s7, 0  ;;  %p1161_p4 = scmp.eq.s32.totalorder %s1457_s10, 0 }
  0x1c   : > { %s110_s16 = sld [smem:[#allocation7 + %s1043_s6]]  ;;  %s82_s19 = ssub.s32 %s1043_s6, %s1534_s8 }
  0x1d   : > { %p1168_p6 = por %p1161_p4, %p100_p2  ;;  %s114_s18 = sld [smem:[#allocation7 + %s1534_s8]] }
  0x1e   : > { %s666_s14 = sadd.s32 4294967295, %s74_s9  ;;  %p1177_p7 = por %p95_p3, %p94_p1 }
  0x1f   : > { %p667_p5 = scmp.gt.s32.totalorder %s666_s14, 0  ;;  %p136_p8 = scmp.ne.s32.totalorder %s1019_s0, %s1015_s25 }
  0x20   : > { %s668_s21 = sadd.s32 4294967295, %s78_s13  ;;  %s123_s27 = sadd.s32 1, %s1023_s26 }
  0x21   : > { %s1536_s14 = smov (%p667_p5, %s666_s14), 0  ;;  %p669_p9 = scmp.gt.s32.totalorder %s668_s21, 0 }
  0x22   : > { %s670_s9 = sadd.s32 4294967295, %s110_s16  ;;  %p1186_p10 = por %p136_p8, %p1161_p4 }
  0x23   : > { %s1538_s21 = smov (%p669_p9, %s668_s21), 0  ;;  %p671_p11 = scmp.gt.s32.totalorder %s670_s9, 0 }
  0x24   : > { %s672_s10 = sadd.s32 4294967295, %s114_s18  ;;  %s83_s13 = ssub.s32 %s1536_s14, %s1538_s21 }
  0x25   : > { %p673_p12 = scmp.gt.s32.totalorder %s672_s10, 0  ;;  %s84_s25 = sor.u32 %s83_s13, %s82_s19 }
  0x26   : > { %p173_p13 = scmp.eq.s32.totalorder %s82_s19, 0  ;;  %p85_p0 = scmp.eq.s32.totalorder %s84_s25, 0 }
  0x27   : > { %s175_s15 = sadd.s32 1, %s1011_s24  ;;  %s1540_s9 = smov (%p671_p11, %s670_s9), 0 }
  0x28   : > { %s1194_s16 = scalar_select %p85_p0, %s1035_s29, %s87_s12  }
  0x29   : > { %s1542_s10 = smov (%p673_p12, %s672_s10), 0  ;;  %p185_p1 = scmp.ne.s32.totalorder %s1011_s24, %s1007_s23 }
  0x2a   : > { %1485 = sst [smem:[#allocation27_spill]] %s1194_s16  ;;  %s119_s14 = ssub.s32 %s1540_s9, %s1542_s10 }
  0x2b   : > { %s1197_s18 = scalar_select %p173_p13, %s1011_s24, %s175_s15  }
  0x2c   : > { %s120_s21 = sor.u32 %s119_s14, %s82_s19  ;;  %s1487_s13 = sadd.s32 4294967295, %s1047_s7  }
  0x2d   : > { %1486 = sst [smem:[#allocation28_spill]] %s1197_s18  ;;  %p186_p2 = scmp.eq.s32.totalorder %s1487_s13, 1 }
  0x2e   : > { %p121_p4 = scmp.eq.s32.totalorder %s120_s21, 0  ;;  %p191_p5 = scmp.ne.s32.totalorder %s1007_s23, %s1003_s22 }
  0x2f   : > { %p1205_p8 = por %p186_p2, %p185_p1  ;;  %s1490_s25 = sadd.s32 4294967294, %s1047_s7  }
  0x30   : > { %p192_p9 = scmp.eq.s32.totalorder %s1490_s25, 1  ;;  %s1458_s19 = sand.u32 1, %s1035_s29  }
  0x31   : > { %s1488_s12 = scalar_select %p1205_p8, 1, 0 }
  0x32   : > { %s1212_s10 = scalar_select %p121_p4, %s1023_s26, %s123_s27  }
  0x33   : > { %1489 = sst [smem:[#allocation29_spill]] %s1488_s12  ;;  %p1214_p11 = por %p192_p9, %p191_p5 }
  0x34   : > { %1491 = sst [smem:[#allocation30_spill]] %s1212_s10  ;;  %p1467_p13 = scmp.lt.s32.totalorder %s1047_s7, 2 }
  0x35   : > { %s1492_s9 = scalar_select %p1214_p11, 1, 0 }
  0x36   : > { %s676_s15 = sshll.u32 %s1458_s19, 7  ;;  %p130_p0 = scmp.ne.s32.totalorder %s1023_s26, %s1019_s0 }
  0x37   : > { %1493 = sst [smem:[#allocation31_spill]] %s1492_s9  ;;  %p1238_p1 = pnand %p1467_p13, %p1177_p7 }
  0x38   : > { %s700_s14 = scalar_select %p1177_p7, [#allocation7], [#allocation14] }
  0x39   : > { %s701_s21 = scalar_select %p1177_p7, %s1043_s6, 0 }
  0x3a   : > { %s1544_s14 = smov (!%p1467_p13, %s700_s14), [#allocation16]  ;;  %p1244_p2 = por %p130_p0, %p95_p3 }
  0x3b   : > { %s1546_s21 = smov (!%p1467_p13, %s701_s21), 0  ;;  %s223_s19 = scalar_lea.vmem [#allocation8], %s676_s15 }
  0x3c   : > { %s224_s25 = sld [smem:[%s1544_s14 + %s1546_s21]]  ;;  %s1248_s8 = sshll.u32 %s223_s19, 4 }
  0x3d   : > { %1496 = sst [smem:[#allocation32_spill]] %s1248_s8  ;;  %s1469_s20 = sshll.u32 %s1043_s6, 4 }
  0x3e   : > { %s703_s16 = scalar_select %p1244_p2, [#allocation7], [#allocation15] }
  0x3f   : > { %p1258_p3 = pnand %p1467_p13, %p1244_p2  ;;  %p688_p4 = scmp.ge.s32.totalorder %s1047_s7, 1 }
  0x40   : > { %s1550_s16 = smov (!%p1467_p13, %s703_s16), [#allocation17]  ;;  %p280_p5 = scmp.lt.s32.totalorder %s1047_s7, 3 }
  0x41   : > { %s1498_s2 = sld [smem:[#allocation34_spill]]  ;;  %s1500_s14 = sand.u32 1, %s1035_s29  }
  0x42   : > { %s677_s10 = sadd.s32 4294967295, %s224_s25  ;;  %p1276_p9 = pnand %p688_p4, %p280_p5 }
  0x43   : > { %p678_p7 = scmp.gt.s32.totalorder %s677_s10, 0  ;;  %s220_s5 = scalar_lea.sflag [#allocation9], %s1500_s14 }
  0x45   : > { %s1548_s10 = smov (%p678_p7, %s677_s10), 0  ;;  %p855_p7 = pneg %p1238_p1 }
  0x46   : > { %s679_s19 = sshll.u32 %s1548_s10, 4 }
  0x47   : > { %s232_s15 = sadd.s32 %s1469_s20, %s679_s19  ;;  %s858_s8 = scalar_lea.hbm %s1498_s2, 256 }
  0x48   : > { %s681_s21 = sshll.u32 %s232_s15, 3 }
  0x49   : > { %s234_s24 = scalar_lea.hbm %s1498_s2, %s681_s21 }
  0x4a   : > { %s235_s9 = sshll.u32 %s234_s24, 4  ;;  %s236_s9 = int_to_ptr.hbm [resolvable:$true] %s235_s9 }
  0x4b   : > { %s851_s12 = sshra.s32 %s236_s9, 4  ;;  %s852_s12 = int_to_ptr.hbm [resolvable:$true] %s851_s12 }
  0x4c   : > { %s853_s10 = scalar_lea.hbm %s852_s12, 128  ;;  %p859_p4 = scmp.lt.s32.totalorder %s852_s12, %s1498_s2 }
  0x4d   : > { %p854_p0 = scmp.ne.s32.totalorder %s852_s12, %s853_s10  ;;  %p860_p5 = scmp.lt.s32.totalorder %s858_s8, %s853_s10 }
  0x4f   : > { %p856_p12 = pnand %p855_p7, %p854_p0  ;;  %p861_p11 = por %p860_p5, %p859_p4 }
  0x51   : > { %p857_p13 = pneg %p856_p12 }
  0x53   : > { %p862_p8 = pnand %p861_p11, %p857_p13 }
  0x55   : > { %865 = shalt.err (!%p862_p8)
}
  0x56   : > { %s1050_s14 = smov 128   ;;  %s1501_s25 = sld [smem:[#allocation32_spill]] }
  0x57   : > { %s1051_s20 = smov 8   ;;  %p1504_p11 = scmp.lt.s32.totalorder %s1047_s7, 2 }
  0x58   : > { %s1503_s12 = scalar_select %p1244_p2, %s1043_s6, 0 }
  0x59   : > { %s247_s15 = sand.u32 1, %s1023_s26   ;;  %s1505_s27 = sshll.u32 %s1043_s6, 4 }
  0x5a   : > { %s1552_s12 = smov (!%p1504_p11, %s1503_s12), 0  ;;  %s682_s8 = sshll.u32 %s247_s15, 7 }
  0x5b   : > { %s252_s10 = sld [smem:[%s1550_s16 + %s1552_s12]]  ;;  %s251_s2 = scalar_lea.vmem [#allocation11], %s682_s8 }
  0x5c   : > { %s1502_s19 = int_to_ptr.vmem [resolvable:$true] %s1501_s25  ;;  %s265_s29 = sshll.u32 %s251_s2, 4  ;;  %s266_s29 = int_to_ptr.vmem [resolvable:$true] %s265_s29 }
  0x5d   : > { %715 = dma.hbm_to_vmem [thread:$0]  (!%p1238_p1), %s236_s9, 2048, %s1502_s19, %s220_s5, %s1050_s14, %s1050_s14, %s1051_s20  }
  0x5e   : > { %s248_s16 = scalar_lea.sflag [#allocation12], %s247_s15  ;;  %p885_p13 = pneg %p1258_p3 }
  0x61   : > { %s683_s24 = sadd.s32 4294967295, %s252_s10 }
  0x62   : > { %p684_p8 = scmp.gt.s32.totalorder %s683_s24, 0 }
  0x64   : > { %s1554_s24 = smov (%p684_p8, %s683_s24), 0 }
  0x65   : > { %s685_s21 = sshll.u32 %s1554_s24, 4 }
  0x66   : > { %s260_s4 = sadd.s32 %s685_s21, %s1505_s27 }
  0x67   : > { %s687_s1 = sshll.u32 %s260_s4, 3  ;;  %s888_s4 = scalar_lea.hbm %s1454_s3, 256 }
  0x68   : > { %s262_s5 = scalar_lea.hbm %s1454_s3, %s687_s1 }
  0x69   : > { %s263_s9 = sshll.u32 %s262_s5, 4  ;;  %s264_s9 = int_to_ptr.hbm [resolvable:$true] %s263_s9 }
  0x6a   : > { %s881_s13 = sshra.s32 %s264_s9, 4  ;;  %s882_s13 = int_to_ptr.hbm [resolvable:$true] %s881_s13 }
  0x6b   : > { %s883_s19 = scalar_lea.hbm %s882_s13, 128  ;;  %p889_p0 = scmp.lt.s32.totalorder %s882_s13, %s1454_s3 }
  0x6c   : > { %p884_p12 = scmp.ne.s32.totalorder %s882_s13, %s883_s19  ;;  %p890_p7 = scmp.lt.s32.totalorder %s888_s4, %s883_s19 }
  0x6e   : > { %p886_p1 = pnand %p885_p13, %p884_p12  ;;  %p891_p4 = por %p890_p7, %p889_p0 }
  0x70   : > { %p887_p2 = pneg %p886_p1 }
  0x72   : > { %p892_p5 = pnand %p891_p4, %p887_p2 }
  0x74   : > { %895 = shalt.err (!%p892_p5)
}
  0x75   : > { %720 = dma.hbm_to_vmem [thread:$0]  (!%p1258_p3), %s264_s9, 2048, %s266_s29, %s248_s16, %s1050_s14, %s1050_s14, %s1051_s20  }
  0x76   : > { %284 = sbr.rel (%p1276_p9) target bundleno = 850 (0x352), region = 36  ;;  %s286_s1 = sand.u32 (!%p1276_p9), 1, %s1031_s28  }
  0x77   : > { %s689_s30 = sshll.u32 (!%p1276_p9), %s286_s1, 7  ;;  %s287_s15 = scalar_lea.sflag (!%p1276_p9), [#allocation9], %s286_s1 }
  0x78   : > { %s1326_s24 = scalar_lea.vmem (!%p1276_p9), [#allocation8], %s689_s30 }
  0x7b   : > { %990 = dma.done.wait (%p1168_p6), %s287_s15, 2048  }
  0x7c   : > { %992 = vsyncadd (%p1168_p6), %s287_s15, 4294965248  ;;  %s296_s18 = sand.u32 1, %s1019_s0  }
  0x7d   : > { %s690_s21 = sshll.u32 %s296_s18, 7  ;;  %s297_s29 = scalar_lea.sflag [#allocation12], %s296_s18 }
  0x7e   : > { %s1333_s20 = scalar_lea.vmem [#allocation11], %s690_s21 }
  0x7f   : > { %994 = dma.done.wait (%p1186_p10), %s297_s29, 2048  }
  0x80   : > { %996 = vsyncadd (%p1186_p10), %s297_s29, 4294965248  ;;  %s1506_s22 = sld [smem:[#allocation25_spill]]  ;;  %s336_s14 = sand.u32 1, %s1007_s23   ;;  %vm364_vm0 = vcmask 7168   ;;  %v1052_v0 = vmov -inf   ;;  %v1053_v1 = vmov 0.0  }
  0x81   : > { %s1344_s27 = sshll.u32 %s336_s14, 3  ;;  %365 = vst.msk [vmem:[#allocation3] sm:$0xff] %vm364_vm0, %v1052_v0  ;;  %s1507_s9 = sld [smem:[#allocation33_spill]] }
  0x82   : > { %366 = vst.msk [vmem:[#allocation4] sm:$0xff] %vm364_vm0, %v1053_v1  ;;  %s1508_s2 = sld [smem:[#allocation35_spill]]  ;;  %s338_s4 = scalar_lea.vmem [#allocation13], %s1344_s27 }
  0x83   : > { %367 = vst [vmem:[#allocation5] sm:$0xff] %v1053_v1 }
  0x86   : > { %p339_p3 = scmp.lt.s32.totalorder %s1506_s22, 1  ;;  %s368_s17 = sld [smem:[#allocation7 + %s1506_s22]] }
  0x88   : > { %s1556_s22 = smov (!%p339_p3, %s1506_s22), 1 }
  0x89   : > { %s692_s11 = sshll.u32 %s1556_s22, 3 }
  0x8a   : > { %s342_s16 = scalar_lea.vmem %s1507_s9, %s692_s11  ;;  %s356_s12 = scalar_lea.vmem %s1508_s2, %s692_s11 }
  0x8b   : > { %v361_v2 = vld [vmem:[%s342_s16] sm:$0xff] }
  0x8c   : > { %v362_v3 = vmul.f32 0.17677669, %v361_v2  ;;  %p695_p6 = scmp.le.s32.totalorder %s368_s17, 0 }
  0x8e   : > { %363 = vst [vmem:[#allocation2] sm:$0xff] %v362_v3  ;;  %372 = sbr.rel (%p695_p6) target bundleno = 712 (0x2c8), region = 52 }
  0x93   : > { %v389_v4 = vld [vmem:[%s1326_s24 + $0x78] sm:$0xff]  ;;  %v388_v5 = vld [vmem:[%s1326_s24 + $0x70] sm:$0xff]  ;;  %v387_v6 = vld [vmem:[%s1326_s24 + $0x68] sm:$0xff]  ;;  %v1054_v14 = vmov 0   ;;  %v410_v23 = vlaneseq }
  0x94   : > { %390 = vmatpush.xpose.msra.mxu0 %v389_v4  ;;  %v386_v7 = vld [vmem:[%s1326_s24 + $0x60] sm:$0xff]  ;;  %v385_v8 = vld [vmem:[%s1326_s24 + $0x58] sm:$0xff]  ;;  %v384_v9 = vld [vmem:[%s1326_s24 + $0x50] sm:$0xff]  ;;  %830 = vset.pattern.permute.xlu0 %v1054_v14 }
  0x95   : > { %v383_v10 = vld [vmem:[%s1326_s24 + $0x48] sm:$0xff]  ;;  %v382_v11 = vld [vmem:[%s1326_s24 + $0x40] sm:$0xff]  ;;  %v381_v12 = vld [vmem:[%s1326_s24 + $0x38] sm:$0xff]  ;;  %831 = vset.pattern.permute.xlu1 %v1054_v14  ;;  %v411_v24 = vand.u32 127, %v410_v23 }
  0x96   : > { %v415_v13 = vld [vmem:[%s356_s12] sm:$0xff]  ;;  %v380_v15 = vld [vmem:[%s1326_s24 + $0x30] sm:$0xff]  ;;  %v379_v16 = vld [vmem:[%s1326_s24 + $0x28] sm:$0xff] }
  0x97   : > { %417 = vperm.xlu0 %830, %v415_v13   ;;  %v378_v17 = vld [vmem:[%s1326_s24 + $0x20] sm:$0xff]  ;;  %v377_v18 = vld [vmem:[%s1326_s24 + $0x18] sm:$0xff]  ;;  %v376_v19 = vld [vmem:[%s1326_s24 + $0x10] sm:$0xff]  ;;  %vm421_vm2 = vcmp.lt.s32.totalorder %v411_v24, 8 }
  0x98   : > { %391 = vmatpush.xpose.msra.mxu0 %v388_v5  ;;  %v375_v20 = vld [vmem:[%s1326_s24 + $0x8] sm:$0xff]  ;;  %v374_v21 = vld [vmem:[%s1326_s24] sm:$0xff]  ;;  %v467_v29 = vld [vmem:[%s1333_s20 + $0x78] sm:$0xff] }
  0x99   : > { %v373_v22 = vld [vmem:[#allocation2] sm:$0xff]  ;;  %v466_v30 = vld [vmem:[%s1333_s20 + $0x70] sm:$0xff]  ;;  %468 = vmatpush.msra.mxu1 %v467_v29  ;;  %v465_v31 = vld [vmem:[%s1333_s20 + $0x68] sm:$0xff] }
  0x9a   : > { %v464_v32 = vld [vmem:[%s1333_s20 + $0x60] sm:$0xff]  ;;  %v463_v33 = vld [vmem:[%s1333_s20 + $0x58] sm:$0xff]  ;;  %v462_v34 = vld [vmem:[%s1333_s20 + $0x50] sm:$0xff] }
  0x9b   : > { %469 = vmatpush.msra.mxu1 %v466_v30  ;;  %v461_v35 = vld [vmem:[%s1333_s20 + $0x48] sm:$0xff]  ;;  %v460_v36 = vld [vmem:[%s1333_s20 + $0x40] sm:$0xff]  ;;  %v459_v37 = vld [vmem:[%s1333_s20 + $0x38] sm:$0xff] }
  0x9c   : > { %392 = vmatpush.xpose.msra.mxu0 %v387_v6  ;;  %v423_v38 = vld [vmem:[#allocation3] sm:$0xff]  ;;  %v458_v39 = vld [vmem:[%s1333_s20 + $0x30] sm:$0xff]  ;;  %v456_v46 = vld [vmem:[%s1333_s20 + $0x20] sm:$0xff] }
  0x9d   : > { %470 = vmatpush.msra.mxu1 %v465_v31  ;;  %v457_v45 = vld [vmem:[%s1333_s20 + $0x28] sm:$0xff]  ;;  %v455_v47 = vld [vmem:[%s1333_s20 + $0x18] sm:$0xff]  ;;  %v454_v48 = vld [vmem:[%s1333_s20 + $0x10] sm:$0xff] }
  0x9e   : > { %v453_v49 = vld [vmem:[%s1333_s20 + $0x8] sm:$0xff]  ;;  %v452_v50 = vld [vmem:[%s1333_s20] sm:$0xff]  ;;  %v438_v55 = vld [vmem:[#allocation4] sm:$0xff] }
  0x9f   : > { %471 = vmatpush.msra.mxu1 %v464_v32  ;;  %v445_v59 = vld [vmem:[#allocation5] sm:$0xff] }
  0xa0   : > { %393 = vmatpush.xpose.msra.mxu0 %v386_v7 }
  0xa1   : > { %472 = vmatpush.msra.mxu1 %v463_v33 }
  0xa3   : > { %473 = vmatpush.msra.mxu1 %v462_v34 }
  0xa4   : > { %394 = vmatpush.xpose.msra.mxu0 %v385_v8 }
  0xa5   : > { %474 = vmatpush.msra.mxu1 %v461_v35 }
  0xa7   : > { %475 = vmatpush.msra.mxu1 %v460_v36 }
  0xa8   : > { %395 = vmatpush.xpose.msra.mxu0 %v384_v9 }
  0xa9   : > { %476 = vmatpush.msra.mxu1 %v459_v37 }
  0xab   : > { %477 = vmatpush.msra.mxu1 %v458_v39 }
  0xac   : > { %396 = vmatpush.xpose.msra.mxu0 %v383_v10 }
  0xad   : > { %478 = vmatpush.msra.mxu1 %v457_v45 }
  0xaf   : > { %479 = vmatpush.msra.mxu1 %v456_v46 }
  0xb0   : > { %397 = vmatpush.xpose.msra.mxu0 %v382_v11 }
  0xb1   : > { %480 = vmatpush.msra.mxu1 %v455_v47 }
  0xb3   : > { %481 = vmatpush.msra.mxu1 %v454_v48 }
  0xb4   : > { %398 = vmatpush.xpose.msra.mxu0 %v381_v12 }
  0xb5   : > { %482 = vmatpush.msra.mxu1 %v453_v49 }
  0xb7   : > { %483 = vmatpush.msra.mxu1 %v452_v50 }
  0xb8   : > { %399 = vmatpush.xpose.msra.mxu0 %v380_v15 }
  0xbc   : > { %400 = vmatpush.xpose.msra.mxu0 %v379_v16 }
  0xc0   : > { %401 = vmatpush.xpose.msra.mxu0 %v378_v17 }
  0xc4   : > { %402 = vmatpush.xpose.msra.mxu0 %v377_v18 }
  0xc8   : > { %403 = vmatpush.xpose.msra.mxu0 %v376_v19 }
  0xcc   : > { %404 = vmatpush.xpose.msra.mxu0 %v375_v20 }
  0xd0   : > { %405 = vmatpush.xpose.msra.mxu0 %v374_v21 }
  0xd3   : > { %406 = vmatmul.f32.vlgmr.msra.gmra.mxu0 %v373_v22 }
 0x109   : > { %v418_v25 = vpop.permute.xlu0 %417 }
 0x10a   : > { %vm419_vm1 = vcmp.lt.s32.totalorder %v411_v24, %v418_v25 }
 0x150   : > { %v407_v26 = vpop.f32.mrf.mxu0 }
 0x151   : > { %v420_v27 = vsel %vm419_vm1, %v407_v26, -1e+20 }
 0x152   : > { %v422_v28 = vsel %vm421_vm2, %v420_v27, -1e+30 }
 0x153   : > { %424 = vmax.xlane.f32.xlu0 %v422_v28 }
 0x1c6   : > { %v425_v40 = vpop.xlane.xlu0 %424 }
 0x1c7   : > { %v426_v41 = vmax.f32 %v423_v38, %v425_v40 }
 0x1c9   : > { %v427_v42 = vsub.f32 %v423_v38, %v426_v41  ;;  %490 = vst.msk [vmem:[#allocation3] sm:$0xff] %vm364_vm0, %v426_v41  ;;  %432 = vperm.xlu1 %831, %v426_v41  }
 0x1cb   : > { %v428_v43 = vmul.f32 1.442695, %v427_v42 }
 0x1cd   : > { %832 = vpow2.f32 %v428_v43 }
 0x1d3   : > { %v833_v44 = vpop.eup %832 }
 0x1d4   : > { %448 = vperm.xlu1 %831, %v833_v44   ;;  %v439_v56 = vmul.f32 %v833_v44, %v438_v55 }
 0x23b   : > { %v433_v51 = vpop.permute.xlu1 %432 }
 0x23c   : > { %v435_v52 = vsub.f32 %v422_v28, %v433_v51 }
 0x23e   : > { %v436_v53 = vmul.f32 1.442695, %v435_v52 }
 0x240   : > { %834 = vpow2.f32 %v436_v53 }
 0x246   : > { %v835_v54 = vpop.eup %834  ;;  %v449_v60 = vpop.permute.xlu1 %448 }
 0x247   : > { %440 = vadd.xlane.f32.xlu2 %v835_v54  ;;  %484 = vmatmul.f32.vlgmr.msra.gmra.mxu1 %v835_v54  ;;  %v451_v61 = vmul.f32 %v449_v60, %v445_v59 }
 0x2ba   : > { %v441_v57 = vpop.xlane.xlu2 %440 }
 0x2bb   : > { %v442_v58 = vadd.f32 %v441_v57, %v439_v56 }
 0x2bd   : > { %444 = vst.msk [vmem:[#allocation4] sm:$0xff] %vm364_vm0, %v442_v58 }
 0x2c4   : > { %v485_v62 = vpop.f32.mrf.mxu1 }
 0x2c5   : > { %v488_v63 = vadd.f32 %v485_v62, %v451_v61 }
 0x2c7   : > { %489 = vst [vmem:[#allocation5] sm:$0xff] %v488_v63 }
 0x2c8 PF: > { %v494_v0 = vld [vmem:[#allocation4] sm:$0xff]  ;;  %v1055_v1 = vmov 0   ;;  %s1509_s10 = sld [smem:[#allocation25_spill]]  ;;  %s530_s29 = sshll.u32 %s338_s4, 4  ;;  %s531_s29 = int_to_ptr.vmem [resolvable:$true] %s530_s29 }
 0x2c9   : > { %836 = vset.pattern.permute.xlu0 %v1055_v1  ;;  %837 = vrcp.f32 %v494_v0  ;;  %v506_v4 = vand.u32 2147483648, %v494_v0  ;;  %vm500_vm3 = vweird.f32 %v494_v0  ;;  %v504_v6 = vand.u32 2147483647, %v494_v0  ;;  %s1510_s8 = sld [smem:[#allocation29_spill]]  ;;  %s518_s22 = scalar_lea.sflag [#allocation10], %s336_s14 }
 0x2ca   : > { %s1511_s24 = sld [smem:[#allocation36_spill]] }
 0x2cb   : > { %v507_v8 = vor.u32 1.1754944e-38, %v506_v4  ;;  %vm505_vm6 = vcmp.eq.f32.partialorder %v504_v6, 8.507059e+37 }
 0x2ce   : > { %s697_s1 = sshll.u32 %s1509_s10, 3  ;;  %v509_v12 = vld [vmem:[#allocation5] sm:$0xff] }
 0x2cf   : > { %v838_v2 = vpop.eup %837  ;;  %p1513_p9 = scmp.ne.s32.totalorder %s1510_s8, 0 }
 0x2d0   : > { %v496_v3 = vmul.f32 %v838_v2, %v494_v0  ;;  %vm501_vm4 = vweird.f32 %v838_v2  ;;  %s1512_s18 = smov %s1511_s24  ;;  %s528_s21 = scalar_lea.hbm %s1511_s24, %s697_s1 }
 0x2d1   : > { %vm502_vm5 = vmor %vm500_vm3, %vm501_vm4  ;;  %s532_s20 = sshll.u32 %s528_s21, 4  ;;  %s931_s9 = scalar_lea.hbm %s1512_s18, 16  ;;  %s533_s20 = int_to_ptr.hbm [resolvable:$true] %s532_s20 }
 0x2d2   : > { %v497_v5 = vsub.f32 1.0, %v496_v3  ;;  %s925_s17 = sshra.s32 %s533_s20, 4  ;;  %s926_s17 = int_to_ptr.hbm [resolvable:$true] %s925_s17 }
 0x2d3   : > { %s927_s11 = scalar_lea.hbm %s926_s17, 8  ;;  %p932_p12 = scmp.lt.s32.totalorder %s926_s17, %s1512_s18 }
 0x2d4   : > { %v498_v7 = vmul.f32 %v838_v2, %v497_v5  ;;  %p928_p10 = scmp.ne.s32.totalorder %s926_s17, %s927_s11  ;;  %p933_p13 = scmp.lt.s32.totalorder %s931_s9, %s927_s11 }
 0x2d6   : > { %v499_v9 = vadd.f32 %v838_v2, %v498_v7  ;;  %p929_p11 = pnand %p928_p10, %p1513_p9  ;;  %p934_p1 = por %p933_p13, %p932_p12 }
 0x2d8   : > { %v503_v10 = vsel %vm502_vm5, %v838_v2, %v499_v9  ;;  %p930_p8 = pneg %p929_p11 }
 0x2d9   : > { %v508_v11 = vsel %vm505_vm6, %v507_v8, %v503_v10 }
 0x2da   : > { %512 = vperm.xlu0 %836, %v508_v11   ;;  %p935_p2 = pnand %p934_p1, %p930_p8 }
 0x34c   : > { %v513_v13 = vpop.permute.xlu0 %512 }
 0x34d   : > { %v515_v14 = vmul.f32 %v513_v13, %v509_v12 }
 0x34f   : > { %516 = vst [vmem:[%s338_s4] sm:$0xff] %v515_v14 }
 0x350   : > { %938 = shalt.err (!%p935_p2)
}
 0x351   : > { %708 = dma.vmem_to_hbm [thread:$0]  (%p1513_p9), %s531_s29, 128, %s533_s20, %s518_s22  }
 0x352 PF: > { %s1514_s14 = sld [smem:[#allocation22_spill]]  ;;  %p1517_p7 = scmp.ge.s32.totalorder %s1047_s7, 2 }
 0x353   : > { %s1515_s27 = sld [smem:[#allocation31_spill]] }
 0x358   : > { %s544_s19 = sand.u32 1, %s1514_s14  }
 0x359   : > { %p1516_p0 = scmp.ne.s32.totalorder %s1515_s27, 0  ;;  %s545_s2 = scalar_lea.sflag [#allocation10], %s544_s19 }
 0x35b   : > { %p722_p4 = pnand %p1517_p7, %p1516_p0 }
 0x35d   : > { %p723_p5 = pneg %p722_p4 }
 0x35f   : > { %998 = dma.done.wait (%p723_p5), %s545_s2, 128  }
 0x360   : > { %1000 = vsyncadd (%p723_p5), %s545_s2, 4294967168  ;;  %s32_s7 = sadd.s32 1, %s1047_s7   ;;  %s1518_s12 = sld [smem:[#allocation23_spill]] }
 0x361   : > { %p29_p3 = scmp.ge.s32.totalorder %s32_s7, 4   ;;  %s1519_s24 = sld [smem:[#allocation28_spill]] }
 0x362   : > { %s1520_s4 = sld [smem:[#allocation30_spill]]  ;;  %s1524_s22 = smov %s1007_s23 }
 0x363   : > { %s1521_s10 = sld [smem:[#allocation24_spill]]  ;;  %s1526_s25 = smov %s1019_s0 }
 0x364   : > { %s1522_s29 = sld [smem:[#allocation27_spill]]  ;;  %s1527_s0 = smov %s1023_s26 }
 0x365   : > { %s1523_s8 = sld [smem:[#allocation26_spill]]  ;;  %s1529_s27 = smov %s1031_s28 }
 0x366   : > { %s1525_s23 = smov %s1518_s12  ;;  %s1531_s30 = smov %s1043_s6 }
 0x367   :  { %31 = sbr.rel (!%p29_p3) target bundleno = 20 (0x14), region = 112 }
 0x368   : > { %s1528_s26 = smov %s1520_s4 }
 0x369   : > { %s1530_s28 = smov %s1521_s10 }
 0x36b   : > { %s1532_s6 = smov %s1523_s8 }
 0x36c   :  { %551 = vsyncpa [#allocation9], 1 }
 0x36d   :  { %553 = vsyncpa [#allocation9 + $0x1], 1 }
 0x36e   :  { %554 = vsyncpa [#allocation12], 1 }
 0x36f   :  { %556 = vsyncpa [#allocation12 + $0x1], 1 }
 0x370   :  { %557 = vsyncpa [#allocation10], 1 }
 0x371   :  { %559 = vsyncpa [#allocation10 + $0x1], 1 }

</bundles_post_ra>
